<compile_context>
chip_gen: v5e
topology: v5e:2x2
jax: 0.10.0
libtpu: 0.0.40
codegen_flags: <defaults>
</compile_context>

<pallas_src>
import functools

import jax
import jax.numpy as jnp
from jax.experimental import pallas as pl
from jax.experimental.pallas import tpu as pltpu

H_UP = 64          # nn.Upsample(size=(64, 1)) spatial height
D_IN = 64          # mlp input dim
D_HID = 256        # mlp output dim / SE channels
D_SE = 256 // 16   # SE bottleneck (reduction=16)
LN_EPS = 1e-5


def pse_kernel(x_ref, w1_ref, b1_ref, gamma_ref, beta_ref,
               wse1_ref, wse2_ref, out_ref):
    # ---- mlp: Linear(64 -> 256). Operands may be bf16; accumulation is f32. ----
    h = jnp.dot(x_ref[...], w1_ref[...],
                preferred_element_type=jnp.float32) + b1_ref[...]      # (Bb, 256)

    # ---- GELU (exact erf form; PyTorch nn.GELU default) ----
    h = 0.5 * h * (1.0 + jax.lax.erf(h * 0.7071067811865476))

    # ---- LayerNorm(256): two-pass statistics (row reductions ride the XLU) ----
    mu = jnp.mean(h, axis=-1, keepdims=True)
    d = h - mu
    var = jnp.mean(d * d, axis=-1, keepdims=True)
    # max(var, 0) is a no-op for real rows; it only guards garbage padded rows
    # of a partial last tile from producing NaN (results there are discarded).
    v = d * jax.lax.rsqrt(jnp.maximum(var, 0.0) + LN_EPS)
    v = v * gamma_ref[...] + beta_ref[...]                             # (Bb, 256) f32

    # ---- SEBlock(256, reduction=16) ----
    # Upsample is pure replication along H, so AdaptiveAvgPool2d(1) == identity:
    # the pooled descriptor is exactly v; no replicated tensor is materialized.
    s = jnp.dot(v, wse1_ref[...], preferred_element_type=jnp.float32)  # (Bb, 16)
    s = jnp.maximum(s, 0.0)                                            # ReLU
    s = jnp.dot(s, wse2_ref[...], preferred_element_type=jnp.float32)  # (Bb, 256)
    s = jax.nn.sigmoid(s)                                              # EUP

    # Gate on the small tensor; H-replication is fused outside the kernel.
    out_ref[...] = v * s


def prepare_params(params, *, use_bf16_matmul=False):
    """One-time parameter prep (transposes / reshapes / optional bf16 cast),
    hoisted out of the hot path."""
    w1, b1, gamma, beta, wse1, wse2 = params
    w1_t = jnp.asarray(w1, jnp.float32).T                    # (64, 256)
    if use_bf16_matmul:
        w1_t = w1_t.astype(jnp.bfloat16)                     # cast once, not per step
    return (
        w1_t,
        jnp.asarray(b1, jnp.float32).reshape(1, D_HID),
        jnp.asarray(gamma, jnp.float32).reshape(1, D_HID),
        jnp.asarray(beta, jnp.float32).reshape(1, D_HID),
        jnp.asarray(wse1, jnp.float32).T,                    # (256, 16)
        jnp.asarray(wse2, jnp.float32).T,                    # (16, 256)
    )


def _default_b_blk(B):
    """Largest batch tile (cap 1024, multiple of 8) that still yields >=2 grid
    steps when B > 8, so 'parallel' can shard the batch over both v7x TCs."""
    if B <= 8:
        return B
    half = (((B + 1) // 2) + 7) // 8 * 8
    return min(1024, half)


def pse_processor_gated(x, prepped_params, *, b_blk=None):
    """Core fused op: x (B, 64) f32 -> SE-gated features (B, 256) f32.

    Prefer this entry point when the downstream consumer can fuse the
    H-replication itself (removes ~64x of the HBM traffic)."""
    assert x.ndim == 2 and x.shape[1] == D_IN, x.shape
    B = x.shape[0]
    w1_t, b1, gamma, beta, wse1_t, wse2_t = prepped_params

    if b_blk is None:
        b_blk = _default_b_blk(B)
    grid = (pl.cdiv(B, b_blk),)

    # bf16 path: cast x once at the boundary so operand dtypes match w1.
    if x.dtype != w1_t.dtype:
        x = x.astype(w1_t.dtype)

    # Advisory cost hint so XLA schedules/overlaps the custom call.
    flops = B * (2 * D_IN * D_HID + 4 * D_HID * D_SE)
    transcendentals = B * 2 * D_HID                              # erf + sigmoid
    param_bytes = (D_IN * D_HID * w1_t.dtype.itemsize
                   + 3 * D_HID * 4
                   + 2 * D_HID * D_SE * 4)
    bytes_accessed = B * (D_IN * x.dtype.itemsize + D_HID * 4) + param_bytes
    cost = pl.CostEstimate(flops=int(flops),
                           transcendentals=int(transcendentals),
                           bytes_accessed=int(bytes_accessed))

    return pl.pallas_call(
        pse_kernel,
        out_shape=jax.ShapeDtypeStruct((B, D_HID), jnp.float32),
        grid=grid,
        in_specs=[
            pl.BlockSpec((b_blk, D_IN), lambda i: (i, 0)),     # x: tiled over batch
            pl.BlockSpec((D_IN, D_HID), lambda i: (0, 0)),     # w1^T: VMEM-resident
            pl.BlockSpec((1, D_HID), lambda i: (0, 0)),        # b1
            pl.BlockSpec((1, D_HID), lambda i: (0, 0)),        # gamma
            pl.BlockSpec((1, D_HID), lambda i: (0, 0)),        # beta
            pl.BlockSpec((D_HID, D_SE), lambda i: (0, 0)),     # wse1^T
            pl.BlockSpec((D_SE, D_HID), lambda i: (0, 0)),     # wse2^T
        ],
        out_specs=pl.BlockSpec((b_blk, D_HID), lambda i: (i, 0)),
        compiler_params=pltpu.CompilerParams(
            dimension_semantics=("parallel",)),                # both TCs on v7x
        cost_estimate=cost,
    )(x, w1_t, b1, gamma, beta, wse1_t, wse2_t)


def pse_processor(x, prepped_params, *, b_blk=None):
    """Module-equivalent forward: x (B, 64) f32 -> (B, 256, 64, 1) f32 (NCHW).

    Run under jit so the single broadcast (the unavoidable 64 KiB/row output
    write) fuses with the kernel's output instead of a separate launch+re-read.
    """
    gated = pse_processor_gated(x, prepped_params, b_blk=b_blk)
    B = gated.shape[0]
    # out[b, c, h, 0] = gated[b, c]
    return jnp.broadcast_to(gated[:, :, None, None], (B, D_HID, H_UP, 1))


def init_params(key):
    """PyTorch-shaped parameters for PSEProcessor."""
    k1, k2, k3, k4 = jax.random.split(key, 4)
    w1 = jax.random.normal(k1, (D_HID, D_IN), jnp.float32) * 0.05      # Linear(64,256).weight
    b1 = jax.random.normal(k2, (D_HID,), jnp.float32) * 0.05           # Linear(64,256).bias
    gamma = jnp.ones((D_HID,), jnp.float32)                            # LayerNorm.weight
    beta = jnp.zeros((D_HID,), jnp.float32)                            # LayerNorm.bias
    wse1 = jax.random.normal(k3, (D_SE, D_HID), jnp.float32) * 0.05    # SE fc1 (no bias)
    wse2 = jax.random.normal(k4, (D_HID, D_SE), jnp.float32) * 0.05    # SE fc2 (no bias)
    return (w1, b1, gamma, beta, wse1, wse2)


def pse_processor_ref(x, params):
    """Pure-JAX reference mirroring the PyTorch forward exactly."""
    w1, b1, gamma, beta, wse1, wse2 = params
    h = x @ w1.T + b1
    h = 0.5 * h * (1.0 + jax.lax.erf(h * 0.7071067811865476))
    mu = jnp.mean(h, axis=-1, keepdims=True)
    var = jnp.mean((h - mu) ** 2, axis=-1, keepdims=True)
    v = (h - mu) * jax.lax.rsqrt(var + LN_EPS) * gamma + beta           # (B, 256)
    u = jnp.broadcast_to(v[:, :, None, None], v.shape + (H_UP, 1))      # (B,256,64,1)
    y = jnp.mean(u, axis=(2, 3))                                        # (B, 256)
    s = jax.nn.sigmoid(jnp.maximum(y @ wse1.T, 0.0) @ wse2.T)           # (B, 256)
    return u * s[:, :, None, None]


if __name__ == "__main__":
    key = jax.random.PRNGKey(0)
    kx0, kx1, kp = jax.random.split(key, 3)
    params = init_params(kp)
    prepped = prepare_params(params)          # f32 path: bit-matches PyTorch

    fwd = jax.jit(pse_processor)

    # Case 1: small single-tile batch.
    B0 = 8
    x0 = jax.random.normal(kx0, (B0, D_IN), jnp.float32)
    out0 = jax.block_until_ready(fwd(x0, prepped))
    ref0 = pse_processor_ref(x0, params)
    assert out0.shape == (B0, D_HID, H_UP, 1), out0.shape
    assert jnp.allclose(out0, ref0, atol=1e-4, rtol=1e-4)

    # Case 2: multi-step grid with a partial last tile (exercises batch tiling,
    # megacore-friendly >=2 grid steps, and padded-row handling).
    B1 = 20
    x1 = jax.random.normal(kx1, (B1, D_IN), jnp.float32)
    out1 = jax.block_until_ready(fwd(x1, prepped))
    ref1 = pse_processor_ref(x1, params)
    assert out1.shape == (B1, D_HID, H_UP, 1), out1.shape
    assert jnp.allclose(out1, ref1, atol=1e-4, rtol=1e-4)

    print("KERNEL_OK")
</pallas_src>

<mosaic_0001>
module attributes {stable_mosaic.version = 11 : i64} {
  func.func @pse_kernel(%arg0: i32, %arg1: memref<8x64xf32, #tpu.memory_space<vmem>>, %arg2: memref<64x256xf32, #tpu.memory_space<vmem>>, %arg3: memref<1x256xf32, #tpu.memory_space<vmem>>, %arg4: memref<1x256xf32, #tpu.memory_space<vmem>>, %arg5: memref<1x256xf32, #tpu.memory_space<vmem>>, %arg6: memref<256x16xf32, #tpu.memory_space<vmem>>, %arg7: memref<16x256xf32, #tpu.memory_space<vmem>>, %arg8: memref<8x256xf32, #tpu.memory_space<vmem>>) attributes {dimension_semantics = [#tpu.dimension_semantics<parallel>], iteration_bounds = array<i64: 1>, scalar_prefetch = 0 : i64, scratch_operands = 0 : i64, tpu.core_type = #tpu.core_type<tc>, window_params = [{transform_indices = @transform_0, window_bounds = array<i64: 8, 64>}, {pipeline_mode = #tpu.pipeline_mode<synchronous>, transform_indices = @transform_1, window_bounds = array<i64: 64, 256>}, {pipeline_mode = #tpu.pipeline_mode<synchronous>, transform_indices = @transform_2, window_bounds = array<i64: 1, 256>}, {pipeline_mode = #tpu.pipeline_mode<synchronous>, transform_indices = @transform_3, window_bounds = array<i64: 1, 256>}, {pipeline_mode = #tpu.pipeline_mode<synchronous>, transform_indices = @transform_4, window_bounds = array<i64: 1, 256>}, {pipeline_mode = #tpu.pipeline_mode<synchronous>, transform_indices = @transform_5, window_bounds = array<i64: 256, 16>}, {pipeline_mode = #tpu.pipeline_mode<synchronous>, transform_indices = @transform_6, window_bounds = array<i64: 16, 256>}, {transform_indices = @transform_7, window_bounds = array<i64: 8, 256>}]} {
    %c0 = arith.constant 0 : index
    %c0_0 = arith.constant 0 : index
    %0 = vector.load %arg1[%c0, %c0_0] : memref<8x64xf32, #tpu.memory_space<vmem>>, vector<8x64xf32>
    %c0_1 = arith.constant 0 : index
    %c0_2 = arith.constant 0 : index
    %1 = vector.load %arg2[%c0_1, %c0_2] : memref<64x256xf32, #tpu.memory_space<vmem>>, vector<64x256xf32>
    %cst = arith.constant dense<0.000000e+00> : vector<8x256xf32>
    %2 = tpu.matmul %0, %1, %cst {dimension_numbers = #tpu.dot_dimension_numbers<[1], [0], [0], [1], [0, 0, 1, 1], [], []>} : vector<8x64xf32>, vector<64x256xf32>, vector<8x256xf32> -> vector<8x256xf32>
    %c0_3 = arith.constant 0 : index
    %c0_4 = arith.constant 0 : index
    %3 = vector.load %arg3[%c0_3, %c0_4] : memref<1x256xf32, #tpu.memory_space<vmem>>, vector<1x256xf32>
    %4 = vector.broadcast %3 : vector<1x256xf32> to vector<8x256xf32>
    %5 = arith.addf %2, %4 : vector<8x256xf32>
    %cst_5 = arith.constant 5.000000e-01 : f32
    %6 = vector.broadcast %cst_5 : f32 to vector<8x256xf32>
    %7 = arith.mulf %6, %5 : vector<8x256xf32>
    %cst_6 = arith.constant 0.707106769 : f32
    %8 = vector.broadcast %cst_6 : f32 to vector<8x256xf32>
    %9 = arith.mulf %5, %8 : vector<8x256xf32>
    %10 = math.erf %9 : vector<8x256xf32>
    %cst_7 = arith.constant 1.000000e+00 : f32
    %11 = vector.broadcast %cst_7 : f32 to vector<8x256xf32>
    %12 = arith.addf %11, %10 : vector<8x256xf32>
    %13 = arith.mulf %7, %12 : vector<8x256xf32>
    %cst_8 = arith.constant dense<0.000000e+00> : vector<8xf32>
    %14 = vector.multi_reduction <add>, %13, %cst_8 [1] : vector<8x256xf32> to vector<8xf32>
    %15 = vector.shape_cast %14 : vector<8xf32> to vector<8x1xf32>
    %cst_9 = arith.constant 2.560000e+02 : f32
    %16 = vector.broadcast %cst_9 : f32 to vector<8x1xf32>
    %17 = arith.divf %15, %16 : vector<8x1xf32>
    %18 = vector.broadcast %17 : vector<8x1xf32> to vector<8x256xf32>
    %19 = arith.subf %13, %18 : vector<8x256xf32>
    %20 = arith.mulf %19, %19 : vector<8x256xf32>
    %cst_10 = arith.constant dense<0.000000e+00> : vector<8xf32>
    %21 = vector.multi_reduction <add>, %20, %cst_10 [1] : vector<8x256xf32> to vector<8xf32>
    %22 = vector.shape_cast %21 : vector<8xf32> to vector<8x1xf32>
    %cst_11 = arith.constant 2.560000e+02 : f32
    %23 = vector.broadcast %cst_11 : f32 to vector<8x1xf32>
    %24 = arith.divf %22, %23 : vector<8x1xf32>
    %cst_12 = arith.constant 0.000000e+00 : f32
    %25 = vector.broadcast %cst_12 : f32 to vector<8x1xf32>
    %26 = arith.maximumf %24, %25 : vector<8x1xf32>
    %cst_13 = arith.constant 9.99999974E-6 : f32
    %27 = vector.broadcast %cst_13 : f32 to vector<8x1xf32>
    %28 = arith.addf %26, %27 : vector<8x1xf32>
    %29 = math.rsqrt %28 : vector<8x1xf32>
    %30 = vector.broadcast %29 : vector<8x1xf32> to vector<8x256xf32>
    %31 = arith.mulf %19, %30 : vector<8x256xf32>
    %c0_14 = arith.constant 0 : index
    %c0_15 = arith.constant 0 : index
    %32 = vector.load %arg4[%c0_14, %c0_15] : memref<1x256xf32, #tpu.memory_space<vmem>>, vector<1x256xf32>
    %33 = vector.broadcast %32 : vector<1x256xf32> to vector<8x256xf32>
    %34 = arith.mulf %31, %33 : vector<8x256xf32>
    %c0_16 = arith.constant 0 : index
    %c0_17 = arith.constant 0 : index
    %35 = vector.load %arg5[%c0_16, %c0_17] : memref<1x256xf32, #tpu.memory_space<vmem>>, vector<1x256xf32>
    %36 = vector.broadcast %35 : vector<1x256xf32> to vector<8x256xf32>
    %37 = arith.addf %34, %36 : vector<8x256xf32>
    %c0_18 = arith.constant 0 : index
    %c0_19 = arith.constant 0 : index
    %38 = vector.load %arg6[%c0_18, %c0_19] : memref<256x16xf32, #tpu.memory_space<vmem>>, vector<256x16xf32>
    %cst_20 = arith.constant dense<0.000000e+00> : vector<8x16xf32>
    %39 = tpu.matmul %37, %38, %cst_20 {dimension_numbers = #tpu.dot_dimension_numbers<[1], [0], [0], [1], [0, 0, 1, 1], [], []>} : vector<8x256xf32>, vector<256x16xf32>, vector<8x16xf32> -> vector<8x16xf32>
    %cst_21 = arith.constant 0.000000e+00 : f32
    %40 = vector.broadcast %cst_21 : f32 to vector<8x16xf32>
    %41 = arith.maximumf %39, %40 : vector<8x16xf32>
    %c0_22 = arith.constant 0 : index
    %c0_23 = arith.constant 0 : index
    %42 = vector.load %arg7[%c0_22, %c0_23] : memref<16x256xf32, #tpu.memory_space<vmem>>, vector<16x256xf32>
    %cst_24 = arith.constant dense<0.000000e+00> : vector<8x256xf32>
    %43 = tpu.matmul %41, %42, %cst_24 {dimension_numbers = #tpu.dot_dimension_numbers<[1], [0], [0], [1], [0, 0, 1, 1], [], []>} : vector<8x16xf32>, vector<16x256xf32>, vector<8x256xf32> -> vector<8x256xf32>
    %44 = arith.negf %43 : vector<8x256xf32>
    %45 = math.exp %44 : vector<8x256xf32>
    %cst_25 = arith.constant 1.000000e+00 : f32
    %46 = vector.broadcast %cst_25 : f32 to vector<8x256xf32>
    %47 = arith.addf %46, %45 : vector<8x256xf32>
    %48 = arith.divf %46, %47 : vector<8x256xf32>
    %49 = arith.mulf %37, %48 : vector<8x256xf32>
    %c0_26 = arith.constant 0 : index
    %c0_27 = arith.constant 0 : index
    %50 = vector.load %arg8[%c0_26, %c0_27] : memref<8x256xf32, #tpu.memory_space<vmem>>, vector<8x256xf32>
    tpu.vector_store %arg8[%c0_26, %c0_27], %49 {strides = array<i32>} : memref<8x256xf32, #tpu.memory_space<vmem>>, vector<8x256xf32>,
    return
  }
  func.func @transform_0(%arg0: i32) -> (i32, i32) {
    %c0_i32 = arith.constant 0 : i32
    %c0_i32_0 = arith.constant 0 : i32
    return %arg0, %c0_i32 : i32, i32
  }
  func.func @transform_1(%arg0: i32) -> (i32, i32) {
    %c0_i32 = arith.constant 0 : i32
    %c0_i32_0 = arith.constant 0 : i32
    %c0_i32_1 = arith.constant 0 : i32
    return %c0_i32, %c0_i32_0 : i32, i32
  }
  func.func @transform_2(%arg0: i32) -> (i32, i32) {
    %c0_i32 = arith.constant 0 : i32
    %c0_i32_0 = arith.constant 0 : i32
    %c0_i32_1 = arith.constant 0 : i32
    return %c0_i32, %c0_i32_0 : i32, i32
  }
  func.func @transform_3(%arg0: i32) -> (i32, i32) {
    %c0_i32 = arith.constant 0 : i32
    %c0_i32_0 = arith.constant 0 : i32
    %c0_i32_1 = arith.constant 0 : i32
    return %c0_i32, %c0_i32_0 : i32, i32
  }
  func.func @transform_4(%arg0: i32) -> (i32, i32) {
    %c0_i32 = arith.constant 0 : i32
    %c0_i32_0 = arith.constant 0 : i32
    %c0_i32_1 = arith.constant 0 : i32
    return %c0_i32, %c0_i32_0 : i32, i32
  }
  func.func @transform_5(%arg0: i32) -> (i32, i32) {
    %c0_i32 = arith.constant 0 : i32
    %c0_i32_0 = arith.constant 0 : i32
    %c0_i32_1 = arith.constant 0 : i32
    return %c0_i32, %c0_i32_0 : i32, i32
  }
  func.func @transform_6(%arg0: i32) -> (i32, i32) {
    %c0_i32 = arith.constant 0 : i32
    %c0_i32_0 = arith.constant 0 : i32
    %c0_i32_1 = arith.constant 0 : i32
    return %c0_i32, %c0_i32_0 : i32, i32
  }
  func.func @transform_7(%arg0: i32) -> (i32, i32) {
    %c0_i32 = arith.constant 0 : i32
    %c0_i32_0 = arith.constant 0 : i32
    return %arg0, %c0_i32 : i32, i32
  }
}

</mosaic_0001>

<bundles_post_ra>
// kernel: pse_processor.1
= control target key start
LH: loop header
LB: loop body
LE: loop exit
PB: predicated region body
PF: predicated region fallthrough
CT: control target
= control target key end

     0   :  { %vm49_vm0 = vcmask 523264   ;;  %vm307_vm13 = vcmask 130048   ;;  %s669_s1 = inlined_call_operand.vmem [shape: f32[64,256], index: 1, kind: input, shape index: {}]   ;;  %s670_s0 = inlined_call_operand.vmem [shape: f32[8,64], index: 0, kind: input, shape index: {}]   ;;  %s671_s2 = inlined_call_operand.vmem [shape: f32[1,256], index: 2, kind: input, shape index: {}]   ;;  %s672_s5 = inlined_call_operand.vmem [shape: f32[256,16], index: 5, kind: input, shape index: {}]   ;;  %s673_s6 = inlined_call_operand.vmem [shape: f32[16,256], index: 6, kind: input, shape index: {}]   ;;  %s674_s3 = inlined_call_operand.vmem [shape: f32[1,256], index: 3, kind: input, shape index: {}]   ;;  %s675_s4 = inlined_call_operand.vmem [shape: f32[1,256], index: 4, kind: input, shape index: {}]   ;;  %s676_s7 = inlined_call_operand.vmem [shape: f32[8,256], index: 7, kind: output, shape index: {}]  }
   0x1   :  { %v41_v0 = vld [vmem:[%s669_s1 + $0x70] sm:$0xff]  ;;  %v42_v1 = vld [vmem:[%s669_s1 + $0x78] sm:$0xff]  ;;  %v39_v2 = vld [vmem:[%s669_s1 + $0x60] sm:$0xff] }
   0x2   :  { %61 = vmatpush.msra.mxu0 %v41_v0  ;;  %81 = vmatpush.msra.mxu1 %v42_v1  ;;  %v40_v3 = vld [vmem:[%s669_s1 + $0x68] sm:$0xff]  ;;  %v37_v4 = vld [vmem:[%s669_s1 + $0x50] sm:$0xff]  ;;  %v38_v5 = vld [vmem:[%s669_s1 + $0x58] sm:$0xff] }
   0x3   :  { %v35_v6 = vld [vmem:[%s669_s1 + $0x40] sm:$0xff]  ;;  %v36_v7 = vld [vmem:[%s669_s1 + $0x48] sm:$0xff]  ;;  %v33_v8 = vld [vmem:[%s669_s1 + $0x30] sm:$0xff] }
   0x4   :  { %62 = vmatpush.msra.mxu0 %v39_v2  ;;  %82 = vmatpush.msra.mxu1 %v40_v3  ;;  %v34_v9 = vld [vmem:[%s669_s1 + $0x38] sm:$0xff]  ;;  %v31_v10 = vld [vmem:[%s669_s1 + $0x20] sm:$0xff]  ;;  %v32_v11 = vld [vmem:[%s669_s1 + $0x28] sm:$0xff] }
   0x5   :  { %v29_v12 = vld [vmem:[%s669_s1 + $0x10] sm:$0xff]  ;;  %v30_v13 = vld [vmem:[%s669_s1 + $0x18] sm:$0xff]  ;;  %v27_v14 = vld [vmem:[%s669_s1] sm:$0xff] }
   0x6   :  { %63 = vmatpush.msra.mxu0 %v37_v4  ;;  %83 = vmatpush.msra.mxu1 %v38_v5  ;;  %v28_v15 = vld [vmem:[%s669_s1 + $0x8] sm:$0xff]  ;;  %v26_v16 = vld [vmem:[%s670_s0] sm:$0xff] }
   0x7   :  { %v43_v17 = vld [vmem:[%s671_s2] sm:$0x3] }
   0x8   :  { %64 = vmatpush.msra.mxu0 %v35_v6  ;;  %84 = vmatpush.msra.mxu1 %v36_v7  ;;  %v45_v18 = vperm.slane %v43_v17, 0  ;;  %v46_v19 = vperm.slane %v43_v17, 1 }
   0xa   :  { %65 = vmatpush.msra.mxu0 %v33_v8  ;;  %85 = vmatpush.msra.mxu1 %v34_v9 }
   0xc   :  { %66 = vmatpush.msra.mxu0 %v31_v10  ;;  %86 = vmatpush.msra.mxu1 %v32_v11 }
   0xe   :  { %67 = vmatpush.msra.mxu0 %v29_v12  ;;  %87 = vmatpush.msra.mxu1 %v30_v13 }
  0x10   :  { %68 = vmatpush.msra.mxu0 %v27_v14  ;;  %88 = vmatpush.msra.mxu1 %v28_v15 }
  0x11   :  { %397 = vmatmul.msk.f32.vlgmr.msra.gmra.mxu0 %vm49_vm0, %v26_v16  ;;  %398 = vmatmul.msk.f32.vlgmr.msra.gmra.mxu1 %vm49_vm0, %v26_v16 }
  0x8e   :  { %v70_v20 = vpop.f32.mrf.mxu0  ;;  %v90_v21 = vpop.f32.mrf.mxu1 }
  0x8f   :  { %v517_v22 = vadd.f32 %v70_v20, %v45_v18  ;;  %v519_v23 = vadd.f32 %v90_v21, %v46_v19 }
  0x91   :  { %v522_v24 = vmul.f32 0.70710677, %v517_v22  ;;  %v525_v25 = vmul.f32 0.70710677, %v519_v23 }
  0x93   :  { %v97_v26 = vmul.f32 %v522_v24, %v522_v24  ;;  %v137_v27 = vmul.f32 %v525_v25, %v525_v25 }
  0x95   :  { %v98_v28 = vmin.f32 %v97_v26, 16.0  ;;  %v138_v29 = vmin.f32 %v137_v27, 16.0 }
  0x97   :  { %v99_v30 = vmul.f32 2.1237322e-06, %v98_v28  ;;  %v139_v31 = vmul.f32 2.1237322e-06, %v138_v29  ;;  %v110_v32 = vmul.f32 3.8918573e-05, %v98_v28 }
  0x98   :  { %v150_v33 = vmul.f32 3.8918573e-05, %v138_v29 }
  0x99   :  { %v100_v34 = vadd.f32 0.00028619796, %v99_v30  ;;  %v140_v35 = vadd.f32 0.00028619796, %v139_v31  ;;  %v111_v36 = vadd.f32 0.001143296, %v110_v32 }
  0x9a   :  { %v151_v37 = vadd.f32 0.001143296, %v150_v33 }
  0x9b   :  { %v101_v38 = vmul.f32 %v100_v34, %v98_v28  ;;  %v141_v39 = vmul.f32 %v140_v35, %v138_v29  ;;  %v112_v40 = vmul.f32 %v111_v36, %v98_v28  ;;  %v93_v36 = vmul.f32 0.5, %v517_v22 }
  0x9c   :  { %v152_v41 = vmul.f32 %v151_v37, %v138_v29 }
  0x9d   :  { %v102_v42 = vadd.f32 0.0036580483, %v101_v38  ;;  %v113_v43 = vadd.f32 0.014752088, %v112_v40  ;;  %v142_v45 = vadd.f32 0.0036580483, %v141_v39 }
  0x9e   :  { %v153_v44 = vadd.f32 0.014752088, %v152_v41  ;;  %v94_v38 = vmul.f32 0.5, %v519_v23 }
  0x9f   :  { %v114_v46 = vmul.f32 %v113_v43, %v98_v28  ;;  %v103_v48 = vmul.f32 %v102_v42, %v98_v28  ;;  %v143_v51 = vmul.f32 %v142_v45, %v138_v29  ;;  %v422_v42 = vmov 256.0   ;;  %v261_v43 = vld [vmem:[%s672_s5 + $0xf8] sm:$0xff] }
  0xa0   :  { %v154_v47 = vmul.f32 %v153_v44, %v138_v29  ;;  %282 = vmatpush.msra.mxu3 %v261_v43 }
  0xa1   :  { %v115_v49 = vadd.f32 0.112945676, %v114_v46  ;;  %v104_v54 = vadd.f32 0.05243302, %v103_v48  ;;  %v144_v57 = vadd.f32 0.05243302, %v143_v51 }
  0xa2   :  { %v155_v50 = vadd.f32 0.112945676, %v154_v47 }
  0xa3   :  { %v116_v52 = vmul.f32 %v115_v49, %v98_v28  ;;  %v105_v60 = vmul.f32 %v104_v54, %v98_v28  ;;  %v145_v63 = vmul.f32 %v144_v57, %v138_v29  ;;  %v243_v57 = vld [vmem:[%s672_s5 + $0x68] sm:$0xff] }
  0xa4   :  { %v156_v53 = vmul.f32 %v155_v50, %v138_v29 }
  0xa5   :  { %v117_v55 = vadd.f32 0.4994258, %v116_v52  ;;  %v106_v0 = vadd.f32 0.18741608, %v105_v60  ;;  %v146_v1 = vadd.f32 0.18741608, %v145_v63 }
  0xa6   :  { %v157_v56 = vadd.f32 0.4994258, %v156_v53  ;;  %v258_v60 = vld [vmem:[%s672_s5 + $0xe0] sm:$0xff]  ;;  %v240_v63 = vld [vmem:[%s672_s5 + $0x50] sm:$0xff] }
  0xa7   :  { %v118_v58 = vmul.f32 %v117_v55, %v98_v28  ;;  %v107_v3 = vmul.f32 %v106_v0, %v98_v28  ;;  %v147_v6 = vmul.f32 %v146_v1, %v138_v29  ;;  %v244_v55 = vld [vmem:[%s672_s5 + $0x70] sm:$0xff]  ;;  %v239_v1 = vld [vmem:[%s672_s5 + $0x48] sm:$0xff] }
  0xa8   :  { %v158_v59 = vmul.f32 %v157_v56, %v138_v29  ;;  %v260_v56 = vld [vmem:[%s672_s5 + $0xf0] sm:$0xff] }
  0xa9   :  { %v119_v61 = vadd.f32 1.0, %v118_v58  ;;  %v108_v9 = vadd.f32 1.1283791, %v107_v3  ;;  %v148_v15 = vadd.f32 1.1283791, %v147_v6  ;;  %283 = vmatpush.msra.mxu3 %v260_v56  ;;  %v259_v58 = vld [vmem:[%s672_s5 + $0xe8] sm:$0xff] }
  0xaa   :  { %v159_v62 = vadd.f32 1.0, %v158_v59  ;;  %v242_v59 = vld [vmem:[%s672_s5 + $0x60] sm:$0xff]  ;;  %v256_v0 = vld [vmem:[%s672_s5 + $0xd0] sm:$0xff]  ;;  %v253_v6 = vld [vmem:[%s672_s5 + $0xb8] sm:$0xff] }
  0xab   :  { %406 = vrcp.f32 %v119_v61  ;;  %v131_v10 = vand.u32 2147483648, %v119_v61  ;;  %v129_v13 = vand.u32 2147483647, %v119_v61  ;;  %vm125_vm3 = vweird.f32 %v119_v61  ;;  %284 = vmatpush.msra.mxu3 %v259_v58  ;;  %v238_v3 = vld [vmem:[%s672_s5 + $0x40] sm:$0xff] }
  0xac   :  { %408 = vrcp.f32 %v159_v62  ;;  %v171_v14 = vand.u32 2147483648, %v159_v62  ;;  %v169_v17 = vand.u32 2147483647, %v159_v62  ;;  %vm165_vm5 = vweird.f32 %v159_v62 }
  0xad   :  { %v132_v19 = vor.u32 1.1754944e-38, %v131_v10  ;;  %v109_v21 = vmul.f32 %v108_v9, %v522_v24  ;;  %vm130_vm6 = vcmp.eq.f32.partialorder %v129_v13, 8.507059e+37  ;;  %v149_v28 = vmul.f32 %v148_v15, %v525_v25  ;;  %v245_v25 = vld [vmem:[%s672_s5 + $0x78] sm:$0xff]  ;;  %285 = vmatpush.msra.mxu3 %v258_v60  ;;  %v235_v9 = vld [vmem:[%s672_s5 + $0x28] sm:$0xff]  ;;  %v232_v15 = vld [vmem:[%s672_s5 + $0x10] sm:$0xff] }
  0xae   :  { %v172_v27 = vor.u32 1.1754944e-38, %v171_v14  ;;  %vm170_vm8 = vcmp.eq.f32.partialorder %v169_v17, 8.507059e+37  ;;  %410 = vrcp.f32 %v422_v42  ;;  %262 = vmatpush.msra.mxu2 %v245_v25  ;;  %v251_v10 = vld [vmem:[%s672_s5 + $0xa8] sm:$0xff]  ;;  %v233_v13 = vld [vmem:[%s672_s5 + $0x18] sm:$0xff] }
  0xaf   :  { %v249_v14 = vld [vmem:[%s672_s5 + $0x98] sm:$0xff]  ;;  %v231_v17 = vld [vmem:[%s672_s5 + $0x8] sm:$0xff] }
  0xb0   :  { %263 = vmatpush.msra.mxu2 %v244_v55 }
  0xb1   :  { %v407_v2 = vpop.eup %406 }
  0xb2   :  { %v409_v4 = vpop.eup %408  ;;  %v121_v5 = vmul.f32 %v407_v2, %v119_v61  ;;  %vm126_vm1 = vweird.f32 %v407_v2  ;;  %264 = vmatpush.msra.mxu2 %v243_v57  ;;  %v241_v61 = vld [vmem:[%s672_s5 + $0x58] sm:$0xff] }
  0xb3   :  { %v161_v7 = vmul.f32 %v409_v4, %v159_v62  ;;  %vm166_vm2 = vweird.f32 %v409_v4  ;;  %vm127_vm4 = vmor %vm125_vm3, %vm126_vm1  ;;  %v257_v62 = vld [vmem:[%s672_s5 + $0xd8] sm:$0xff] }
  0xb4   :  { %v122_v8 = vsub.f32 1.0, %v121_v5  ;;  %vm167_vm7 = vmor %vm165_vm5, %vm166_vm2  ;;  %v411_v22 = vpop.eup %410  ;;  %265 = vmatpush.msra.mxu2 %v242_v59  ;;  %286 = vmatpush.msra.mxu3 %v257_v62  ;;  %v237_v5 = vld [vmem:[%s672_s5 + $0x38] sm:$0xff] }
  0xb5   :  { %v162_v11 = vsub.f32 1.0, %v161_v7  ;;  %v185_v44 = vmul.f32 256.0, %v411_v22  ;;  %vm189_vm9 = vweird.f32 %v411_v22  ;;  %v236_v7 = vld [vmem:[%s672_s5 + $0x30] sm:$0xff] }
  0xb6   :  { %v123_v12 = vmul.f32 %v407_v2, %v122_v8  ;;  %266 = vmatpush.msra.mxu2 %v241_v61  ;;  %287 = vmatpush.msra.mxu3 %v256_v0  ;;  %v252_v8 = vld [vmem:[%s672_s5 + $0xb0] sm:$0xff] }
  0xb7   :  { %v163_v16 = vmul.f32 %v409_v4, %v162_v11  ;;  %v186_v23 = vsub.f32 1.0, %v185_v44  ;;  %v234_v11 = vld [vmem:[%s672_s5 + $0x20] sm:$0xff] }
  0xb8   :  { %v124_v18 = vadd.f32 %v407_v2, %v123_v12  ;;  %267 = vmatpush.msra.mxu2 %v240_v63  ;;  %v250_v12 = vld [vmem:[%s672_s5 + $0xa0] sm:$0xff] }
  0xb9   :  { %v164_v20 = vadd.f32 %v409_v4, %v163_v16  ;;  %v187_v45 = vmul.f32 %v411_v22, %v186_v23  ;;  %v248_v16 = vld [vmem:[%s672_s5 + $0x90] sm:$0xff] }
  0xba   :  { %v128_v26 = vsel %vm127_vm4, %v407_v2, %v124_v18  ;;  %v255_v2 = vld [vmem:[%s672_s5 + $0xc8] sm:$0xff]  ;;  %268 = vmatpush.msra.mxu2 %v239_v1 }
  0xbb   :  { %v133_v29 = vsel %vm130_vm6, %v132_v19, %v128_v26  ;;  %v168_v30 = vsel %vm167_vm7, %v409_v4, %v164_v20  ;;  %v188_v46 = vadd.f32 %v411_v22, %v187_v45  ;;  %288 = vmatpush.msra.mxu3 %v255_v2  ;;  %v254_v4 = vld [vmem:[%s672_s5 + $0xc0] sm:$0xff]  ;;  %v247_v18 = vld [vmem:[%s672_s5 + $0x88] sm:$0xff]  ;;  %v306_v26 = vld [vmem:[%s673_s6 + $0x18] sm:$0xff] }
  0xbc   :  { %v134_v31 = vmul.f32 %v133_v29, %v109_v21  ;;  %v173_v32 = vsel %vm170_vm8, %v172_v27, %v168_v30  ;;  %269 = vmatpush.msra.mxu2 %v238_v3  ;;  %v230_v19 = vld [vmem:[%s672_s5] sm:$0xff]  ;;  %v305_v21 = vld [vmem:[%s673_s6 + $0x10] sm:$0xff]  ;;  %345 = vmatpush.msrb.mxu1 %v306_v26 }
  0xbd   :  { %v174_v33 = vmul.f32 %v173_v32, %v149_v28  ;;  %v541_v47 = vsel %vm189_vm9, %v411_v22, %v188_v46  ;;  %289 = vmatpush.msra.mxu3 %v254_v4  ;;  %v246_v20 = vld [vmem:[%s672_s5 + $0x80] sm:$0xff]  ;;  %325 = vmatpush.msrb.mxu0 %v305_v21 }
  0xbe   :  { %v399_v34 = vclamps-f32 %v134_v31, 1.0  ;;  %270 = vmatpush.msra.mxu2 %v237_v5  ;;  %v303_v46 = vld [vmem:[%s673_s6] sm:$0xff] }
  0xbf   :  { %v400_v35 = vclamps-f32 %v174_v33, 1.0  ;;  %290 = vmatpush.msra.mxu3 %v253_v6  ;;  %326 = vmatpush.msrb.mxu0 %v303_v46 }
  0xc0   :  { %v177_v37 = vadd.f32 1.0, %v399_v34  ;;  %271 = vmatpush.msra.mxu2 %v236_v7 }
  0xc1   :  { %v178_v24 = vadd.f32 1.0, %v400_v35  ;;  %291 = vmatpush.msra.mxu3 %v252_v8 }
  0xc2   :  { %v179_v39 = vmul.f32 %v177_v37, %v93_v36  ;;  %272 = vmatpush.msra.mxu2 %v235_v9  ;;  %v214_v36 = vld [vmem:[%s674_s3] sm:$0x3] }
  0xc3   :  { %v180_v40 = vmul.f32 %v178_v24, %v94_v38  ;;  %292 = vmatpush.msra.mxu3 %v251_v10  ;;  %v222_v38 = vld [vmem:[%s675_s4] sm:$0x3]  ;;  %v216_v24 = vperm.slane %v214_v36, 0 }
  0xc4   :  { %273 = vmatpush.msra.mxu2 %v234_v11  ;;  %v224_v42 = vperm.slane %v222_v38, 0  ;;  %v225_v43 = vperm.slane %v222_v38, 1 }
  0xc5   :  { %v181_v41 = vadd.f32 %v180_v40, %v179_v39  ;;  %293 = vmatpush.msra.mxu3 %v250_v12 }
  0xc6   :  { %274 = vmatpush.msra.mxu2 %v233_v13 }
  0xc7   :  { %182 = vadd.xlane.f32.xlu0 %v181_v41  ;;  %294 = vmatpush.msra.mxu3 %v249_v14 }
  0xc8   :  { %275 = vmatpush.msra.mxu2 %v232_v15 }
  0xc9   :  { %295 = vmatpush.msra.mxu3 %v248_v16 }
  0xca   :  { %276 = vmatpush.msra.mxu2 %v231_v17 }
  0xcb   :  { %296 = vmatpush.msra.mxu3 %v247_v18 }
  0xcc   :  { %277 = vmatpush.msra.mxu2 %v230_v19 }
  0xcd   :  { %297 = vmatpush.msra.mxu3 %v246_v20 }
 0x13a   :  { %v183_v48 = vpop.xlane.xlu0 %182 }
 0x13b   :  { %v191_v49 = vmul.f32 %v541_v47, %v183_v48 }
 0x13d   :  { %v544_v50 = vsub.f32 %v179_v39, %v191_v49  ;;  %v546_v51 = vsub.f32 %v180_v40, %v191_v49  ;;  %v217_v39 = vperm.slane %v214_v36, 1 }
 0x13f   :  { %v194_v52 = vmul.f32 %v544_v50, %v544_v50  ;;  %v195_v53 = vmul.f32 %v546_v51, %v546_v51 }
 0x141   :  { %v196_v54 = vadd.f32 %v195_v53, %v194_v52 }
 0x143   :  { %197 = vadd.xlane.f32.xlu0 %v196_v54 }
 0x1b6   :  { %v198_v27 = vpop.xlane.xlu0 %197 }
 0x1b7   :  { %v199_v28 = vmul.f32 %v198_v27, %v541_v47  ;;  %v304_v47 = vld [vmem:[%s673_s6 + $0x8] sm:$0xff] }
 0x1b8   :  { %346 = vmatpush.msrb.mxu1 %v304_v47 }
 0x1b9   :  { %v200_v29 = vmax.f32 %v199_v28, 0.0 }
 0x1bb   :  { %v201_v30 = vadd.f32 1e-05, %v200_v29 }
 0x1bd   :  { %412 = vrsqrt.f32 %v201_v30  ;;  %vm208_vm11 = vweird.f32 %v201_v30 }
 0x1c3   :  { %v413_v31 = vpop.eup %412 }
 0x1c4   :  { %v203_v32 = vmul.f32 %v413_v31, %v201_v30  ;;  %vm209_vm10 = vweird.f32 %v413_v31 }
 0x1c5   :  { %vm210_vm12 = vmor %vm208_vm11, %vm209_vm10 }
 0x1c6   :  { %v204_v33 = vmul.f32 %v413_v31, %v203_v32 }
 0x1c8   :  { %v205_v34 = vmul.f32 0.5, %v204_v33 }
 0x1ca   :  { %v206_v35 = vsub.f32 1.5, %v205_v34 }
 0x1cc   :  { %v207_v37 = vmul.f32 %v413_v31, %v206_v35 }
 0x1ce   :  { %v211_v40 = vsel %vm210_vm12, %v413_v31, %v207_v37 }
 0x1cf   :  { %v212_v41 = vmul.f32 %v211_v40, %v544_v50  ;;  %v213_v25 = vmul.f32 %v211_v40, %v546_v51 }
 0x1d1   :  { %v220_v22 = vmul.f32 %v216_v24, %v212_v41  ;;  %v221_v44 = vmul.f32 %v217_v39, %v213_v25 }
 0x1d3   :  { %v228_v23 = vadd.f32 %v224_v42, %v220_v22  ;;  %v229_v45 = vadd.f32 %v225_v43, %v221_v44 }
 0x1d5   :  { %278 = vmatmul.f32.vlgmr.msra.gmra.mxu2 %v228_v23  ;;  %298 = vmatmul.f32.vlgmr.msra.gmra.mxu3 %v229_v45 }
 0x258   :  { %v279_v48 = vpop.f32.mrf.mxu2  ;;  %v299_v49 = vpop.f32.mrf.mxu3 }
 0x259   :  { %v300_v50 = vadd.f32 %v299_v49, %v279_v48 }
 0x25b   :  { %v302_v51 = vmax.f32 %v300_v50, 0.0 }
 0x25d   :  { %401 = vmatmul.msk.f32.vlgmr.msrb.gmra.mxu0 %vm307_vm13, %v302_v51  ;;  %402 = vmatmul.msk.f32.vlgmr.msrb.gmra.mxu1 %vm307_vm13, %v302_v51 }
 0x2da   :  { %v328_v52 = vpop.f32.mrf.mxu0  ;;  %v348_v53 = vpop.f32.mrf.mxu1 }
 0x2db   :  { %v403_v54 = vmul.f32 -1.442695, %v328_v52  ;;  %v404_v55 = vmul.f32 -1.442695, %v348_v53 }
 0x2dd   :  { %414 = vpow2.f32 %v403_v54 }
 0x2de   :  { %416 = vpow2.f32 %v404_v55 }
 0x2e3   :  { %v415_v56 = vpop.eup %414 }
 0x2e4   :  { %v417_v57 = vpop.eup %416  ;;  %v357_v58 = vadd.f32 1.0, %v415_v56 }
 0x2e5   :  { %v358_v59 = vadd.f32 1.0, %v417_v57 }
 0x2e6   :  { %418 = vrcp.f32 %v357_v58  ;;  %v370_v1 = vand.u32 2147483648, %v357_v58  ;;  %v368_v4 = vand.u32 2147483647, %v357_v58  ;;  %vm364_vm0 = vweird.f32 %v357_v58 }
 0x2e7   :  { %420 = vrcp.f32 %v358_v59  ;;  %v385_v5 = vand.u32 2147483648, %v358_v59  ;;  %v383_v7 = vand.u32 2147483647, %v358_v59  ;;  %vm379_vm2 = vweird.f32 %v358_v59 }
 0x2e8   :  { %v371_v9 = vor.u32 1.1754944e-38, %v370_v1  ;;  %vm369_vm3 = vcmp.eq.f32.partialorder %v368_v4, 8.507059e+37 }
 0x2e9   :  { %v386_v12 = vor.u32 1.1754944e-38, %v385_v5  ;;  %vm384_vm5 = vcmp.eq.f32.partialorder %v383_v7, 8.507059e+37 }
 0x2ec   :  { %v419_v60 = vpop.eup %418 }
 0x2ed   :  { %v421_v61 = vpop.eup %420  ;;  %v360_v62 = vmul.f32 %v419_v60, %v357_v58  ;;  %vm365_vm14 = vweird.f32 %v419_v60 }
 0x2ee   :  { %v375_v63 = vmul.f32 %v421_v61, %v358_v59  ;;  %vm380_vm15 = vweird.f32 %v421_v61  ;;  %vm366_vm1 = vmor %vm364_vm0, %vm365_vm14 }
 0x2ef   :  { %v361_v0 = vsub.f32 1.0, %v360_v62  ;;  %vm381_vm4 = vmor %vm379_vm2, %vm380_vm15 }
 0x2f0   :  { %v376_v2 = vsub.f32 1.0, %v375_v63 }
 0x2f1   :  { %v362_v3 = vmul.f32 %v419_v60, %v361_v0 }
 0x2f2   :  { %v377_v6 = vmul.f32 %v421_v61, %v376_v2 }
 0x2f3   :  { %v363_v8 = vadd.f32 %v419_v60, %v362_v3 }
 0x2f4   :  { %v378_v10 = vadd.f32 %v421_v61, %v377_v6 }
 0x2f5   :  { %v367_v11 = vsel %vm366_vm1, %v419_v60, %v363_v8 }
 0x2f6   :  { %v372_v13 = vsel %vm369_vm3, %v371_v9, %v367_v11  ;;  %v382_v14 = vsel %vm381_vm4, %v421_v61, %v378_v10 }
 0x2f7   :  { %v389_v15 = vmul.f32 %v372_v13, %v228_v23  ;;  %v387_v16 = vsel %vm384_vm5, %v386_v12, %v382_v14 }
 0x2f8   :  { %v390_v17 = vmul.f32 %v387_v16, %v229_v45 }
 0x2f9   :  { %391 = vst [vmem:[%s676_s7] sm:$0xff] %v389_v15 }
 0x2fa   :  { %392 = vst [vmem:[%s676_s7 + $0x8] sm:$0xff] %v390_v17 }

</bundles_post_ra>
